<compile_context>
chip_gen: v7x
topology: tpu7x:2x2x1
jax: 0.10.0
libtpu: 0.0.40
codegen_flags: <defaults>
</compile_context>

<pallas_src>
import jax
import jax.numpy as jnp
from jax.experimental import pallas as pl
from jax.experimental.pallas import tpu as pltpu


def _identity_kernel(x_ref, o_ref):
    # Whole-tile copy: one vld/vst pair per vreg, no VALU/EUP work.
    o_ref[...] = x_ref[...]


def _round_up(a: int, b: int) -> int:
    return ((a + b - 1) // b) * b


def identity_projection(x, *, max_rows_per_block: int = 1024):
    """Pallas implementation of IdentityProjection.forward: returns x."""
    orig_shape = x.shape
    if x.ndim == 0:
        x2d = x.reshape(1, 1)
    elif x.ndim == 1:
        x2d = x.reshape(-1, 1)
    else:
        # Merge leading (batch) dims only; keep the feature dim last so the
        # reshape is layout-preserving (no relayout copy in XLA).
        x2d = x.reshape(-1, orig_shape[-1])
    n, d = x2d.shape

    # Row-tile selection:
    #  - big tiles (<= max_rows_per_block) to amortize per-step overhead,
    #  - at least 2 blocks when n allows it, so the "parallel" axis can be
    #    sharded across both v7x TensorCores,
    #  - row count a multiple of 8 (sublane) unless it is the full extent.
    if n <= 8:
        tm = n  # full extent is always a legal block dim
    else:
        tm = min(max_rows_per_block, _round_up(pl.cdiv(n, 2), 8))
        tm = min(tm, _round_up(n, 8))
    grid = (pl.cdiv(n, tm),)  # partial last block is masked by Pallas

    out = pl.pallas_call(
        _identity_kernel,
        out_shape=jax.ShapeDtypeStruct((n, d), x.dtype),
        grid_spec=pltpu.PrefetchScalarGridSpec(
            num_scalar_prefetch=0,
            grid=grid,
            in_specs=[pl.BlockSpec((tm, d), lambda i: (i, 0))],
            out_specs=pl.BlockSpec((tm, d), lambda i: (i, 0)),
        ),
        compiler_params=pltpu.CompilerParams(
            dimension_semantics=("parallel",),
        ),
    )(x2d)

    return out.reshape(orig_shape)


if __name__ == "__main__":
    key = jax.random.PRNGKey(0)
    kx, k2 = jax.random.split(key)

    # Module: IdentityProjection(input_dims=3); forward(x) = x.
    input_dims = 3
    x = jax.random.normal(kx, (2, 128, input_dims), dtype=jnp.float32)

    out = identity_projection(x)
    jax.block_until_ready(out)
    assert out.shape == x.shape, out.shape
    assert out.dtype == x.dtype, out.dtype
    assert bool(jnp.array_equal(out, x)), "identity mismatch"

    # Ragged row count: exercises the masked partial last block path
    # (no jnp.pad / out[:n] copy anywhere).
    x2 = jax.random.normal(k2, (5, 37, input_dims), dtype=jnp.float32)
    out2 = identity_projection(x2)
    jax.block_until_ready(out2)
    assert out2.shape == x2.shape, out2.shape
    assert bool(jnp.array_equal(out2, x2)), "identity mismatch (ragged N)"

    print("KERNEL_OK")
</pallas_src>

<mosaic_0001>
module attributes {stable_mosaic.version = 11 : i64} {
  func.func @_identity_kernel(%arg0: i32, %arg1: memref<128x3xf32, #tpu.memory_space<vmem>>, %arg2: memref<128x3xf32, #tpu.memory_space<vmem>>) attributes {dimension_semantics = [#tpu.dimension_semantics<parallel>], iteration_bounds = array<i64: 2>, scalar_prefetch = 0 : i64, scratch_operands = 0 : i64, tpu.core_type = #tpu.core_type<tc>, window_params = [{transform_indices = @transform_0, window_bounds = array<i64: 128, 3>}, {transform_indices = @transform_1, window_bounds = array<i64: 128, 3>}]} {
    %c0 = arith.constant 0 : index
    %c0_0 = arith.constant 0 : index
    %0 = vector.load %arg1[%c0, %c0_0] : memref<128x3xf32, #tpu.memory_space<vmem>>, vector<128x3xf32>
    %c0_1 = arith.constant 0 : index
    %c0_2 = arith.constant 0 : index
    %1 = vector.load %arg2[%c0_1, %c0_2] : memref<128x3xf32, #tpu.memory_space<vmem>>, vector<128x3xf32>
    tpu.vector_store %arg2[%c0_1, %c0_2], %0 {strides = array<i32>} : memref<128x3xf32, #tpu.memory_space<vmem>>, vector<128x3xf32>,
    return
  }
  func.func @transform_0(%arg0: i32) -> (i32, i32) {
    %c0_i32 = arith.constant 0 : i32
    %c0_i32_0 = arith.constant 0 : i32
    return %arg0, %c0_i32 : i32, i32
  }
  func.func @transform_1(%arg0: i32) -> (i32, i32) {
    %c0_i32 = arith.constant 0 : i32
    %c0_i32_0 = arith.constant 0 : i32
    return %arg0, %c0_i32 : i32, i32
  }
}

</mosaic_0001>

<bundles_post_ra>
// kernel: tpu_custom_call.1
= control target key start
LH: loop header
LB: loop body
LE: loop exit
PB: predicated region body
PF: predicated region fallthrough
CT: control target
= control target key end

     0   :  { %s246_s6 = smov 0   ;;  %s315_s0 = inlined_call_operand.vmem [shape: f32[256,3], index: 0, kind: input, shape index: {}]   ;;  %s316_s1 = inlined_call_operand.vmem [shape: f32[256,3], index: 1, kind: output, shape index: {}]  }
   0x1 LB: > { %s209_s7 = sadd.s32 4294967295, %s234_s6   ;;  %p213_p0 = scmp.ge.s32.totalorder %s234_s6, 1  ;;  %s234_s6 = sphi %s246_s6, %s11_s6  }
   0x2   : > { %p88_p1 = scmp.lt.s32.totalorder %s234_s6, 3 }
   0x4   : > { %p89_p2 = pnand %p213_p0, %p88_p1 }
   0x5   : > { %s214_s8 = sshll.u32 (!%p89_p2), %s209_s7, 4  ;;  %vm136_vm0 = vcmask (!%p89_p2), 23552  }
   0x6   : > { %92 = sbr.rel (%p89_p2) target bundleno = 25 (0x19), region = 24  ;;  %p109_p3 = scmp.lt.s32.totalorder (!%p89_p2), %s214_s8, 31 }
   0xd   : > { %s318_s8 = smov (!%p109_p3, %s214_s8), 31 }
   0xe   : > { %s215_s9 = sshll.u32 %s318_s8, 3 }
   0xf   : > { %s257_s12 = scalar_lea.vmem %s315_s0, %s215_s9  ;;  %s262_s15 = scalar_lea.vmem %s316_s1, %s215_s9 }
  0x10   : > { %v120_v0 = vld [vmem:[%s257_s12] sm:$0xff]  ;;  %v121_v1 = vld [vmem:[%s257_s12 + $0x8] sm:$0xff]  ;;  %v122_v2 = vld [vmem:[%s257_s12 + $0x10] sm:$0xff] }
  0x11   : > { %137 = vst.msk [vmem:[%s262_s15] sm:$0xff] %vm136_vm0, %v120_v0  ;;  %138 = vst.msk [vmem:[%s262_s15 + $0x8] sm:$0xff] %vm136_vm0, %v121_v1  ;;  %v123_v3 = vld [vmem:[%s257_s12 + $0x18] sm:$0xff]  ;;  %v124_v4 = vld [vmem:[%s257_s12 + $0x20] sm:$0xff] }
  0x12   : > { %139 = vst.msk [vmem:[%s262_s15 + $0x10] sm:$0xff] %vm136_vm0, %v122_v2  ;;  %v125_v5 = vld [vmem:[%s257_s12 + $0x28] sm:$0xff]  ;;  %140 = vst.msk [vmem:[%s262_s15 + $0x18] sm:$0xff] %vm136_vm0, %v123_v3  ;;  %v126_v6 = vld [vmem:[%s257_s12 + $0x30] sm:$0xff] }
  0x13   : > { %141 = vst.msk [vmem:[%s262_s15 + $0x20] sm:$0xff] %vm136_vm0, %v124_v4  ;;  %142 = vst.msk [vmem:[%s262_s15 + $0x28] sm:$0xff] %vm136_vm0, %v125_v5  ;;  %v127_v7 = vld [vmem:[%s257_s12 + $0x38] sm:$0xff]  ;;  %v128_v8 = vld [vmem:[%s257_s12 + $0x40] sm:$0xff] }
  0x14   : > { %143 = vst.msk [vmem:[%s262_s15 + $0x30] sm:$0xff] %vm136_vm0, %v126_v6  ;;  %144 = vst.msk [vmem:[%s262_s15 + $0x38] sm:$0xff] %vm136_vm0, %v127_v7  ;;  %v129_v9 = vld [vmem:[%s257_s12 + $0x48] sm:$0xff]  ;;  %v130_v10 = vld [vmem:[%s257_s12 + $0x50] sm:$0xff] }
  0x15   : > { %145 = vst.msk [vmem:[%s262_s15 + $0x40] sm:$0xff] %vm136_vm0, %v128_v8  ;;  %v131_v11 = vld [vmem:[%s257_s12 + $0x58] sm:$0xff]  ;;  %146 = vst.msk [vmem:[%s262_s15 + $0x48] sm:$0xff] %vm136_vm0, %v129_v9  ;;  %v132_v12 = vld [vmem:[%s257_s12 + $0x60] sm:$0xff] }
  0x16   : > { %147 = vst.msk [vmem:[%s262_s15 + $0x50] sm:$0xff] %vm136_vm0, %v130_v10  ;;  %148 = vst.msk [vmem:[%s262_s15 + $0x58] sm:$0xff] %vm136_vm0, %v131_v11  ;;  %v133_v13 = vld [vmem:[%s257_s12 + $0x68] sm:$0xff]  ;;  %v134_v14 = vld [vmem:[%s257_s12 + $0x70] sm:$0xff] }
  0x17   : > { %149 = vst.msk [vmem:[%s262_s15 + $0x60] sm:$0xff] %vm136_vm0, %v132_v12  ;;  %150 = vst.msk [vmem:[%s262_s15 + $0x68] sm:$0xff] %vm136_vm0, %v133_v13  ;;  %v135_v15 = vld [vmem:[%s257_s12 + $0x78] sm:$0xff] }
  0x18   : > { %151 = vst.msk [vmem:[%s262_s15 + $0x70] sm:$0xff] %vm136_vm0, %v134_v14  ;;  %152 = vst.msk [vmem:[%s262_s15 + $0x78] sm:$0xff] %vm136_vm0, %v135_v15 }
  0x19 PF: > { %s11_s6 = sadd.s32 1, %s234_s6  }
  0x1a   : > { %p8_p4 = scmp.ge.s32.totalorder %s11_s6, 4  }
  0x1c   :  { %10 = sbr.rel (!%p8_p4) target bundleno = 1 (0x1), region = 54 }

</bundles_post_ra>
